<compile_context>
chip_gen: v6e
topology: v6e:2x2x1
jax: 0.10.0
libtpu: 0.0.40
codegen_flags: <defaults>
</compile_context>

<pallas_src>
import functools

import jax
import jax.numpy as jnp
from jax import lax
from jax.experimental import pallas as pl
from jax.experimental.pallas import tpu as pltpu

_UNROLL_MAX_CLASSES = 16
_LANES = 128


def _vmem_budget_bytes():
    """Scoped-VMEM budget: ~48 MiB on v5e/v6e (128 MiB phys), 48 MiB on v7x (64 MiB phys)."""
    try:
        cap = int(pltpu.get_tpu_info().vmem_capacity_bytes)
    except Exception:
        cap = 64 * 1024 * 1024
    return min(48 * 1024 * 1024, (cap * 3) // 4)


def _min_sublane(dtype):
    size = jnp.dtype(dtype).itemsize
    return {4: 8, 2: 16, 1: 32}.get(size, 8)


def _chunk_loss(x, t, n_classes):
    """x, t: (C, rows, 128) f32 -> per-position cross-entropy loss (rows, 128) f32."""
    if n_classes <= _UNROLL_MAX_CLASSES:
        # Small static class count: fully unrolled VPU/EUP chain over dense planes.
        xs = [x[c] for c in range(n_classes)]
        ts = [t[c] for c in range(n_classes)]

        m = xs[0]
        for c in range(1, n_classes):
            m = jnp.maximum(m, xs[c])

        se = jnp.exp(xs[0] - m)
        for c in range(1, n_classes):
            se = se + jnp.exp(xs[c] - m)
        lse = jnp.log(se) + m                      # (rows, 128)

        tmax = ts[0]
        for c in range(1, n_classes):
            tmax = jnp.maximum(tmax, ts[c])

        # Logit at argmax(target); sweep from the last class down so the
        # smallest matching class index wins (first-occurrence tie-break).
        picked = xs[n_classes - 1]
        for c in range(n_classes - 2, -1, -1):
            picked = jnp.where(ts[c] == tmax, xs[c], picked)
    else:
        # General path: reductions over the (outer) class axis — still dense planes.
        m = jnp.max(x, axis=0)
        lse = jnp.log(jnp.sum(jnp.exp(x - m[None]), axis=0)) + m
        tmax = jnp.max(t, axis=0)
        cls = lax.broadcasted_iota(jnp.int32, x.shape, 0)
        idx = jnp.min(jnp.where(t == tmax[None], cls, n_classes), axis=0)
        picked = jnp.sum(jnp.where(cls == idx[None], x, 0.0), axis=0)

    return lse - picked


def _ce_kernel(x_ref, t_ref, out_ref, acc_ref, *,
               n_classes, s_total, block_rows, sub_rows, needs_mask):
    j = pl.program_id(1)

    @pl.when(j == 0)
    def _():
        acc_ref[...] = jnp.zeros_like(acc_ref)

    def process(r0, chunk_rows):
        # r0: row offset inside this block (static or traced); chunk_rows static.
        x = x_ref[0, :, pl.ds(r0, chunk_rows), :].astype(jnp.float32)  # (C, chunk, 128)
        t = t_ref[0, :, pl.ds(r0, chunk_rows), :].astype(jnp.float32)

        if needs_mask:
            pos = ((j * block_rows + r0) * _LANES
                   + lax.broadcasted_iota(jnp.int32, (chunk_rows, _LANES), 0) * _LANES
                   + lax.broadcasted_iota(jnp.int32, (chunk_rows, _LANES), 1))
            valid = pos < s_total
            # Clamp logits so exp/log stay finite on garbage rows of a partial
            # last block (targets need no clamp: any mismatch just picks a
            # clamped logit, and the final select zeroes the loss anyway).
            x = jnp.where(valid[None, :, :], x, 0.0)

        loss = _chunk_loss(x, t, n_classes)        # (chunk, 128)

        if needs_mask:
            loss = jnp.where(valid, loss, 0.0)

        acc_ref[0:chunk_rows, :] += loss           # dense per-lane partial sums

    num_full = block_rows // sub_rows
    tail = block_rows - num_full * sub_rows

    if num_full == 1:
        process(0, sub_rows)
    elif num_full > 1:
        def body(k, carry):
            process(pl.multiple_of(k * sub_rows, sub_rows), sub_rows)
            return carry
        lax.fori_loop(0, num_full, body, 0, unroll=2)
    if tail:
        process(num_full * sub_rows, tail)

    @pl.when(j == pl.num_programs(1) - 1)
    def _():
        total = jnp.sum(acc_ref[...])              # one cross-lane reduce per image
        out_ref[...] = jnp.broadcast_to(total, out_ref.shape)


def ce_loss(inputs, targets, *, reduction="mean", vmem_limit_bytes=None):
    """JAX/Pallas equivalent of CELoss.forward.

    inputs : (N, C, *spatial) logits
    targets: (N, C, *spatial); class axis is argmax'ed (dim=1), then
             cross-entropy with `reduction`.
    """
    if inputs.ndim < 2:
        raise ValueError("inputs must be (N, C, *spatial)")
    if targets.shape != inputs.shape:
        raise ValueError("targets must have the same shape as inputs")

    n, c = int(inputs.shape[0]), int(inputs.shape[1])
    s = 1
    for d in inputs.shape[2:]:
        s *= int(d)

    x = inputs.reshape(n, c, s)    # contiguous collapse: no data movement
    t = targets.reshape(n, c, s)

    # Pad spatial axis to a multiple of 128 lanes (one extra pass, only when
    # ragged); padded positions are masked out of the sum in-kernel.
    s_pad = pl.cdiv(s, _LANES) * _LANES
    if s_pad != s:
        x = jnp.pad(x, ((0, 0), (0, 0), (0, s_pad - s)))
        t = jnp.pad(t, ((0, 0), (0, 0), (0, s_pad - s)))
    rows = s_pad // _LANES

    # Dense class-plane layout: (N, C, rows, 128). Free contiguous split.
    x = x.reshape(n, c, rows, _LANES)
    t = t.reshape(n, c, rows, _LANES)

    # --- tiling --------------------------------------------------------------
    min_sub = max(_min_sublane(x.dtype), _min_sublane(t.dtype))

    # Compute-chunk rows: bound the per-chunk f32 working set (~2*C*sub*128*4 B)
    # so it fits the vreg file while keeping the inner-loop body meaty.
    sub_rows = (64 * 1024) // (c * _LANES * 4)
    sub_rows = max(min_sub, min(256, (sub_rows // min_sub) * min_sub))

    # DMA-block rows: as large as the double-buffered pipeline budget allows
    # (2 inputs x 2 buffers, actual dtypes), a multiple of sub_rows.
    vmem_budget = _vmem_budget_bytes() if vmem_limit_bytes is None else int(vmem_limit_bytes)
    row_stream_bytes = c * _LANES * (x.dtype.itemsize + t.dtype.itemsize)
    r_cap = ((vmem_budget // 2) // (2 * row_stream_bytes) // sub_rows) * sub_rows
    r_cap = max(sub_rows, r_cap)

    block_rows = rows if rows <= r_cap else r_cap   # full-dim block is always legal
    num_rb = pl.cdiv(rows, block_rows)

    needs_mask = (s_pad != s) or (rows % block_rows != 0)
    acc_rows = min(sub_rows, block_rows)

    kernel = functools.partial(
        _ce_kernel, n_classes=c, s_total=s, block_rows=block_rows,
        sub_rows=sub_rows, needs_mask=needs_mask)

    out = pl.pallas_call(
        kernel,
        out_shape=jax.ShapeDtypeStruct((n, 1, _LANES), jnp.float32),
        grid_spec=pltpu.PrefetchScalarGridSpec(
            num_scalar_prefetch=0,
            grid=(n, num_rb),
            in_specs=[
                pl.BlockSpec((1, c, block_rows, _LANES), lambda i, j: (i, 0, j, 0)),
                pl.BlockSpec((1, c, block_rows, _LANES), lambda i, j: (i, 0, j, 0)),
            ],
            out_specs=pl.BlockSpec((1, 1, _LANES), lambda i, j: (i, 0, 0)),
            scratch_shapes=[pltpu.VMEM((acc_rows, _LANES), jnp.float32)],
        ),
        compiler_params=pltpu.CompilerParams(
            dimension_semantics=("parallel", "arbitrary"),
            vmem_limit_bytes=int(vmem_budget),
        ),
    )(x, t)

    total = jnp.sum(out[:, 0, 0])
    if reduction == "mean":
        return total / (n * s)
    if reduction == "sum":
        return total
    # TODO(synk): reduction='none' (per-element loss map output) not implemented.
    raise NotImplementedError(f"reduction={reduction!r}")


def _reference(logits, targets):
    logp = jax.nn.log_softmax(logits.astype(jnp.float32), axis=1)
    lbl = jnp.argmax(targets, axis=1)
    picked = jnp.take_along_axis(logp, lbl[:, None, ...], axis=1)
    return jnp.mean(-picked)


if __name__ == "__main__":
    key = jax.random.PRNGKey(0)
    k1, k2, k3, k4 = jax.random.split(key, 4)

    # Test 1: small-C unrolled path, lane-aligned spatial extent.
    N, C, H, W = 2, 4, 16, 16
    logits = jax.random.normal(k1, (N, C, H, W), dtype=jnp.float32)
    labels = jax.random.randint(k2, (N, H, W), 0, C)
    targets = jax.nn.one_hot(labels, C, axis=1, dtype=jnp.float32)  # (N,C,H,W)

    loss = jax.block_until_ready(ce_loss(logits, targets))
    ref = _reference(logits, targets)
    assert jnp.allclose(loss, ref, atol=1e-5, rtol=1e-5), (loss, ref)

    # Test 2: large-C general path + ragged spatial extent (exercises padding/mask).
    N2, C2, H2, W2 = 2, 20, 10, 10
    logits2 = jax.random.normal(k3, (N2, C2, H2, W2), dtype=jnp.float32)
    labels2 = jax.random.randint(k4, (N2, H2, W2), 0, C2)
    targets2 = jax.nn.one_hot(labels2, C2, axis=1, dtype=jnp.float32)

    loss2 = jax.block_until_ready(ce_loss(logits2, targets2))
    ref2 = _reference(logits2, targets2)
    assert jnp.allclose(loss2, ref2, atol=1e-5, rtol=1e-5), (loss2, ref2)

    print("KERNEL_OK")
</pallas_src>

<mosaic_0001>
module attributes {stable_mosaic.version = 11 : i64} {
  func.func @_ce_kernel(%arg0: i32, %arg1: i32, %arg2: memref<1x4x2x128xf32, #tpu.memory_space<vmem>>, %arg3: memref<1x4x2x128xf32, #tpu.memory_space<vmem>>, %arg4: memref<1x1x128xf32, #tpu.memory_space<vmem>>, %arg5: memref<2x128xf32, #tpu.memory_space<vmem>>) attributes {dimension_semantics = [#tpu.dimension_semantics<parallel>, #tpu.dimension_semantics<arbitrary>], iteration_bounds = array<i64: 2, 1>, scalar_prefetch = 0 : i64, scratch_operands = 1 : i64, tpu.core_type = #tpu.core_type<tc>, window_params = [{transform_indices = @transform_0, window_bounds = array<i64: 1, 4, 2, 128>}, {transform_indices = @transform_1, window_bounds = array<i64: 1, 4, 2, 128>}, {transform_indices = @transform_2, window_bounds = array<i64: 1, 1, 128>}]} {
    %c0_i32 = arith.constant 0 : i32
    %0 = arith.cmpi eq, %arg1, %c0_i32 : i32
    %1 = arith.extui %0 : i1 to i32
    %c0_i32_0 = arith.constant 0 : i32
    %2 = arith.cmpi ne, %1, %c0_i32_0 : i32
    scf.if %2 {
      %cst = arith.constant 0.000000e+00 : f32
      %55 = vector.broadcast %cst : f32 to vector<2x128xf32>
      %c0_14 = arith.constant 0 : index
      %c0_15 = arith.constant 0 : index
      %56 = vector.load %arg5[%c0_14, %c0_15] : memref<2x128xf32, #tpu.memory_space<vmem>>, vector<2x128xf32>
      tpu.vector_store %arg5[%c0_14, %c0_15], %55 {strides = array<i32>} : memref<2x128xf32, #tpu.memory_space<vmem>>, vector<2x128xf32>,
    } else {
    }
    %c0 = arith.constant 0 : index
    %c0_1 = arith.constant 0 : index
    %c0_2 = arith.constant 0 : index
    %c0_3 = arith.constant 0 : index
    %3 = vector.load %arg2[%c0, %c0_1, %c0_2, %c0_3] : memref<1x4x2x128xf32, #tpu.memory_space<vmem>>, vector<1x4x2x128xf32>
    %4 = vector.shape_cast %3 : vector<1x4x2x128xf32> to vector<4x2x128xf32>
    %c0_4 = arith.constant 0 : index
    %c0_5 = arith.constant 0 : index
    %c0_6 = arith.constant 0 : index
    %c0_7 = arith.constant 0 : index
    %5 = vector.load %arg3[%c0_4, %c0_5, %c0_6, %c0_7] : memref<1x4x2x128xf32, #tpu.memory_space<vmem>>, vector<1x4x2x128xf32>
    %6 = vector.shape_cast %5 : vector<1x4x2x128xf32> to vector<4x2x128xf32>
    %7 = vector.extract_strided_slice %4 {offsets = [0, 0, 0], sizes = [1, 2, 128], strides = [1, 1, 1]} : vector<4x2x128xf32> to vector<1x2x128xf32>
    %8 = vector.shape_cast %7 : vector<1x2x128xf32> to vector<2x128xf32>
    %9 = vector.extract_strided_slice %4 {offsets = [1, 0, 0], sizes = [1, 2, 128], strides = [1, 1, 1]} : vector<4x2x128xf32> to vector<1x2x128xf32>
    %10 = vector.shape_cast %9 : vector<1x2x128xf32> to vector<2x128xf32>
    %11 = vector.extract_strided_slice %4 {offsets = [2, 0, 0], sizes = [1, 2, 128], strides = [1, 1, 1]} : vector<4x2x128xf32> to vector<1x2x128xf32>
    %12 = vector.shape_cast %11 : vector<1x2x128xf32> to vector<2x128xf32>
    %13 = vector.extract_strided_slice %4 {offsets = [3, 0, 0], sizes = [1, 2, 128], strides = [1, 1, 1]} : vector<4x2x128xf32> to vector<1x2x128xf32>
    %14 = vector.shape_cast %13 : vector<1x2x128xf32> to vector<2x128xf32>
    %15 = vector.extract_strided_slice %6 {offsets = [0, 0, 0], sizes = [1, 2, 128], strides = [1, 1, 1]} : vector<4x2x128xf32> to vector<1x2x128xf32>
    %16 = vector.shape_cast %15 : vector<1x2x128xf32> to vector<2x128xf32>
    %17 = vector.extract_strided_slice %6 {offsets = [1, 0, 0], sizes = [1, 2, 128], strides = [1, 1, 1]} : vector<4x2x128xf32> to vector<1x2x128xf32>
    %18 = vector.shape_cast %17 : vector<1x2x128xf32> to vector<2x128xf32>
    %19 = vector.extract_strided_slice %6 {offsets = [2, 0, 0], sizes = [1, 2, 128], strides = [1, 1, 1]} : vector<4x2x128xf32> to vector<1x2x128xf32>
    %20 = vector.shape_cast %19 : vector<1x2x128xf32> to vector<2x128xf32>
    %21 = vector.extract_strided_slice %6 {offsets = [3, 0, 0], sizes = [1, 2, 128], strides = [1, 1, 1]} : vector<4x2x128xf32> to vector<1x2x128xf32>
    %22 = vector.shape_cast %21 : vector<1x2x128xf32> to vector<2x128xf32>
    %23 = arith.maximumf %8, %10 : vector<2x128xf32>
    %24 = arith.maximumf %23, %12 : vector<2x128xf32>
    %25 = arith.maximumf %24, %14 : vector<2x128xf32>
    %26 = arith.subf %8, %25 : vector<2x128xf32>
    %27 = math.exp %26 : vector<2x128xf32>
    %28 = arith.subf %10, %25 : vector<2x128xf32>
    %29 = math.exp %28 : vector<2x128xf32>
    %30 = arith.addf %27, %29 : vector<2x128xf32>
    %31 = arith.subf %12, %25 : vector<2x128xf32>
    %32 = math.exp %31 : vector<2x128xf32>
    %33 = arith.addf %30, %32 : vector<2x128xf32>
    %34 = arith.subf %14, %25 : vector<2x128xf32>
    %35 = math.exp %34 : vector<2x128xf32>
    %36 = arith.addf %33, %35 : vector<2x128xf32>
    %37 = math.log %36 : vector<2x128xf32>
    %38 = arith.addf %37, %25 : vector<2x128xf32>
    %39 = arith.maximumf %16, %18 : vector<2x128xf32>
    %40 = arith.maximumf %39, %20 : vector<2x128xf32>
    %41 = arith.maximumf %40, %22 : vector<2x128xf32>
    %42 = arith.cmpf oeq, %20, %41 : vector<2x128xf32>
    %43 = arith.select %42, %12, %14 : vector<2x128xi1>, vector<2x128xf32>
    %44 = arith.cmpf oeq, %18, %41 : vector<2x128xf32>
    %45 = arith.select %44, %10, %43 : vector<2x128xi1>, vector<2x128xf32>
    %46 = arith.cmpf oeq, %16, %41 : vector<2x128xf32>
    %47 = arith.select %46, %8, %45 : vector<2x128xi1>, vector<2x128xf32>
    %48 = arith.subf %38, %47 : vector<2x128xf32>
    %c0_8 = arith.constant 0 : index
    %c0_9 = arith.constant 0 : index
    %49 = vector.load %arg5[%c0_8, %c0_9] : memref<2x128xf32, #tpu.memory_space<vmem>>, vector<2x128xf32>
    %50 = arith.addf %49, %48 : vector<2x128xf32>
    %c0_10 = arith.constant 0 : index
    %c0_11 = arith.constant 0 : index
    %51 = vector.load %arg5[%c0_10, %c0_11] : memref<2x128xf32, #tpu.memory_space<vmem>>, vector<2x128xf32>
    tpu.vector_store %arg5[%c0_10, %c0_11], %50 {strides = array<i32>} : memref<2x128xf32, #tpu.memory_space<vmem>>, vector<2x128xf32>,
    %c0_i32_12 = arith.constant 0 : i32
    %52 = arith.cmpi eq, %arg1, %c0_i32_12 : i32
    %53 = arith.extui %52 : i1 to i32
    %c0_i32_13 = arith.constant 0 : i32
    %54 = arith.cmpi ne, %53, %c0_i32_13 : i32
    scf.if %54 {
      %c0_14 = arith.constant 0 : index
      %c0_15 = arith.constant 0 : index
      %55 = vector.load %arg5[%c0_14, %c0_15] : memref<2x128xf32, #tpu.memory_space<vmem>>, vector<2x128xf32>
      %56 = vector.shape_cast %55 : vector<2x128xf32> to vector<1x2x128xf32>
      %cst = arith.constant dense<0.000000e+00> : vector<1xf32>
      %57 = vector.multi_reduction <add>, %56, %cst [1, 2] : vector<1x2x128xf32> to vector<1xf32>
      %58 = vector.shape_cast %57 : vector<1xf32> to vector<1x1x1xf32>
      %59 = vector.extract %58[0, 0, 0] : f32 from vector<1x1x1xf32>
      %60 = vector.broadcast %59 : f32 to vector<1x1x128xf32>
      %c0_16 = arith.constant 0 : index
      %c0_17 = arith.constant 0 : index
      %c0_18 = arith.constant 0 : index
      %61 = vector.load %arg4[%c0_16, %c0_17, %c0_18] : memref<1x1x128xf32, #tpu.memory_space<vmem>>, vector<1x1x128xf32>
      tpu.vector_store %arg4[%c0_16, %c0_17, %c0_18], %60 {strides = array<i32>} : memref<1x1x128xf32, #tpu.memory_space<vmem>>, vector<1x1x128xf32>,
    } else {
    }
    return
  }
  func.func @transform_0(%arg0: i32, %arg1: i32) -> (i32, i32, i32, i32) {
    %c0_i32 = arith.constant 0 : i32
    %c0_i32_0 = arith.constant 0 : i32
    %c0_i32_1 = arith.constant 0 : i32
    return %arg0, %c0_i32, %arg1, %c0_i32_0 : i32, i32, i32, i32
  }
  func.func @transform_1(%arg0: i32, %arg1: i32) -> (i32, i32, i32, i32) {
    %c0_i32 = arith.constant 0 : i32
    %c0_i32_0 = arith.constant 0 : i32
    %c0_i32_1 = arith.constant 0 : i32
    return %arg0, %c0_i32, %arg1, %c0_i32_0 : i32, i32, i32, i32
  }
  func.func @transform_2(%arg0: i32, %arg1: i32) -> (i32, i32, i32) {
    %c0_i32 = arith.constant 0 : i32
    %c0_i32_0 = arith.constant 0 : i32
    %c0_i32_1 = arith.constant 0 : i32
    return %arg0, %c0_i32, %c0_i32_0 : i32, i32, i32
  }
}

</mosaic_0001>

<bundles_post_ra>
// kernel: tpu_custom_call.1
= control target key start
LH: loop header
LB: loop body
LE: loop exit
PB: predicated region body
PF: predicated region fallthrough
CT: control target
= control target key end

     0   :  { %7 = vsyncpa [#allocation4], 0  ;;  %s840_s0 = inlined_call_operand.hbm [shape: f32[2,4,2,128], index: 0, kind: input, shape index: {}]   ;;  %s841_s1 = inlined_call_operand.hbm [shape: f32[2,4,2,128], index: 1, kind: input, shape index: {}]   ;;  %s842_s2 = inlined_call_operand.hbm [shape: f32[2,1,128], index: 2, kind: output, shape index: {}]  }
   0x1   :  { %9 = vsyncpa [#allocation4 + $0x1], 0 }
   0x2   :  { %10 = vsyncpa [#allocation7], 0 }
   0x3   :  { %12 = vsyncpa [#allocation7 + $0x1], 0 }
   0x4   :  { %13 = vsyncpa [#allocation5], 0 }
   0x5   :  { %15 = vsyncpa [#allocation5 + $0x1], 0  ;;  %s660_s9 = smov 0   ;;  %s662_s10 = smov 0  }
   0x6   :  { %s664_s11 = smov 0   ;;  %s666_s12 = smov 0  }
   0x7   :  { %s668_s13 = smov 0   ;;  %s670_s14 = smov 0  }
   0x8 LB: > { %s397_s15 = sadd.s32 4294967295, %s637_s14   ;;  %s398_s16 = sadd.s32 4294967294, %s637_s14   ;;  %s637_s14 = sphi %s670_s14, %s21_s14   ;;  %s633_s13 = sphi %s668_s13, %s854_s13   ;;  %s629_s12 = sphi %s666_s12, %s853_s12   ;;  %s625_s11 = sphi %s664_s11, %s852_s11   ;;  %s621_s10 = sphi %s662_s10, %s851_s10   ;;  %s617_s9 = sphi %s660_s9, %s850_s9  }
   0x9   : > { %s33_s17 = sadd.s32 1, %s633_s13  ;;  %s42_s18 = sadd.s32 1, %s625_s11 }
   0xa   : > { %p35_p0 = scmp.ge.s32.totalorder %s33_s17, 2  ;;  %p49_p1 = scmp.ne.s32.totalorder %s625_s11, %s621_s10 }
   0xb   : > { %p50_p2 = scmp.eq.s32.totalorder %s637_s14, 0  ;;  %p55_p3 = scmp.ne.s32.totalorder %s621_s10, %s617_s9 }
   0xc   : > { %s856_s17 = smov (%p35_p0, %s33_s17), 0  ;;  %p56_p5 = scmp.eq.s32.totalorder %s397_s15, 0 }
   0xd   : > { %p701_p4 = por %p50_p2, %p49_p1  ;;  %s37_s20 = ssub.s32 %s633_s13, %s856_s17 }
   0xe   : > { %p107_p6 = scmp.eq.s32.totalorder %s397_s15, 1  ;;  %p40_p7 = scmp.eq.s32.totalorder %s37_s20, 0 }
   0xf   : > { %p707_p8 = por %p56_p5, %p55_p3  ;;  %p113_p10 = scmp.eq.s32.totalorder %s398_s16, 1 }
  0x10   : > { %p711_p9 = por %p107_p6, %p49_p1  ;;  %p434_p13 = scmp.lt.s32.totalorder %s637_s14, 2 }
  0x11   : > { %s716_s23 = scalar_select %p40_p7, %s625_s11, %s42_s18  }
  0x12   : > { %p718_p11 = por %p113_p10, %p55_p3  ;;  %s725_s25 = sand.u32 1, %s625_s11  }
  0x13   : > { %s401_s26 = sshll.u32 %s725_s25, 3  ;;  %s413_s27 = sshll.u32 %s633_s13, 7 }
  0x14   : > { %s144_s30 = scalar_lea.hbm %s840_s0, %s413_s27  ;;  %s137_s3 = scalar_lea.vmem [#allocation3], %s401_s26 }
  0x15   : > { %s145_s4 = sshll.u32 %s137_s3, 4  ;;  %p738_p0 = pnand %p434_p13, %p701_p4  ;;  %s146_s4 = int_to_ptr.vmem [resolvable:$true] %s145_s4 }
  0x16   : > { %p407_p1 = scmp.ge.s32.totalorder %s637_s14, 1  ;;  %s134_s6 = scalar_lea.sflag [#allocation4], %s725_s25 }
  0x17   : > { %p499_p2 = pneg %p738_p0  ;;  %s510_s7 = scalar_lea.vmem %s146_s4, 128 }
  0x18   : > { %p511_p3 = scmp.ne.s32.totalorder %s146_s4, %s510_s7  ;;  %s639_s8 = smov [#allocation3]  }
  0x19   : > { %s515_s15 = sshll.u32 %s639_s8, 4  ;;  %s516_s15 = int_to_ptr.vmem [resolvable:$false] %s515_s15 }
  0x1a   : > { %p513_p5 = pnand %p511_p3, %p499_p2  ;;  %s517_s16 = scalar_lea.vmem %s516_s15, 256 }
  0x1b   : > { %p518_p4 = scmp.lt.s32.totalorder %s146_s4, %s516_s15  ;;  %p519_p7 = scmp.lt.s32.totalorder %s517_s16, %s510_s7 }
  0x1c   : > { %p514_p6 = pneg %p513_p5 }
  0x1d   : > { %p520_p10 = por %p519_p7, %p518_p4 }
  0x1f   : > { %p521_p13 = pnand %p520_p10, %p514_p6 }
  0x21   : > { %524 = shalt.err (!%p521_p13)
}
  0x22   : > { %s640_s18 = smov 32   ;;  %s641_s19 = smov 2  }
  0x23   : > { %426 = dma.hbm_to_vmem [thread:$0]  (!%p738_p0), %s144_s30, 128, %s146_s4, %s134_s6, %s640_s18, %s640_s18, %s641_s19  }
  0x24   : > { %p175_p3 = scmp.lt.s32.totalorder %s637_s14, 3  ;;  %s166_s29 = scalar_lea.hbm %s841_s1, %s413_s27 }
  0x25   : > { %s159_s7 = scalar_lea.vmem [#allocation6], %s401_s26  ;;  %s156_s15 = scalar_lea.sflag [#allocation7], %s725_s25 }
  0x26   : > { %p759_p5 = pnand %p407_p1, %p175_p3  ;;  %s167_s8 = sshll.u32 %s159_s7, 4  ;;  %s168_s8 = int_to_ptr.vmem [resolvable:$true] %s167_s8 }
  0x27   : > { %s538_s16 = scalar_lea.vmem %s168_s8, 128  ;;  %s642_s30 = smov [#allocation6]  }
  0x28   : > { %p539_p6 = scmp.ne.s32.totalorder %s168_s8, %s538_s16  ;;  %s543_s4 = sshll.u32 %s642_s30, 4  ;;  %s544_s4 = int_to_ptr.vmem [resolvable:$false] %s543_s4 }
  0x29   : > { %s545_s27 = scalar_lea.vmem %s544_s4, 256  ;;  %p546_p10 = scmp.lt.s32.totalorder %s168_s8, %s544_s4 }
  0x2a   : > { %p541_p4 = pnand %p539_p6, %p499_p2  ;;  %p547_p1 = scmp.lt.s32.totalorder %s545_s27, %s538_s16 }
  0x2c   : > { %p542_p7 = pneg %p541_p4  ;;  %p548_p13 = por %p547_p1, %p546_p10 }
  0x2e   : > { %p549_p3 = pnand %p548_p13, %p542_p7 }
  0x30   : > { %552 = shalt.err (!%p549_p3)
}
  0x31   : > { %429 = dma.hbm_to_vmem [thread:$0]  (!%p738_p0), %s166_s29, 128, %s168_s8, %s156_s15, %s640_s18, %s640_s18, %s641_s19  }
  0x32   : > { %179 = sbr.rel (%p759_p5) target bundleno = 335 (0x14f), region = 28  ;;  %s774_s25 = sand.u32 (!%p759_p5), 1, %s621_s10  }
  0x33   : > { %s408_s26 = sshll.u32 (!%p759_p5), %s774_s25, 3  ;;  %s182_s6 = scalar_lea.sflag (!%p759_p5), [#allocation4], %s774_s25 }
  0x34   : > { %s185_s20 = scalar_lea.vmem (!%p759_p5), [#allocation3], %s408_s26 }
  0x37   : > { %604 = dma.done.wait (%p707_p8), %s182_s6, 128  }
  0x38   : > { %606 = vsyncadd (%p707_p8), %s182_s6, 4294967168  ;;  %s191_s5 = scalar_lea.sflag [#allocation7], %s774_s25  ;;  %s783_s18 = scalar_lea.vmem [#allocation6], %s408_s26 }
  0x39   : > { %608 = dma.done.wait (%p707_p8), %s191_s5, 128  }
  0x3a   : > { %610 = vsyncadd (%p707_p8), %s191_s5, 4294967168  ;;  %v643_v0 = vmov 0.0   ;;  %v224_v1 = vld [vmem:[%s185_s20] sm:$0x3]  ;;  %v225_v2 = vld [vmem:[%s185_s20 + $0x2] sm:$0x3] }
  0x3b   : > { %223 = vst [vmem:[#allocation2] sm:$0x3] %v643_v0  ;;  %v226_v3 = vld [vmem:[%s185_s20 + $0x4] sm:$0x3]  ;;  %v232_v4 = vmax.f32 %v224_v1, %v225_v2  ;;  %v227_v5 = vld [vmem:[%s185_s20 + $0x6] sm:$0x3] }
  0x3c   : > { %v228_v16 = vld [vmem:[%s783_s18] sm:$0x3]  ;;  %v229_v17 = vld [vmem:[%s783_s18 + $0x2] sm:$0x3]  ;;  %v230_v24 = vld [vmem:[%s783_s18 + $0x4] sm:$0x3] }
  0x3d   : > { %v233_v6 = vmax.f32 %v232_v4, %v226_v3  ;;  %v253_v22 = vmax.f32 %v228_v16, %v229_v17  ;;  %v231_v28 = vld [vmem:[%s783_s18 + $0x6] sm:$0x3]  ;;  %vm270_vm3 = vcmask 1041408   ;;  %s218_s21 = scalar_lea.vmem [#allocation8], %s774_s25  ;;  %s410_s28 = sshll.u32 %s629_s12, 4 }
  0x3e   : > { %s296_s19 = sshll.u32 %s218_s21, 4  ;;  %s294_s8 = scalar_lea.hbm %s842_s2, %s410_s28  ;;  %s795_s19 = int_to_ptr.vmem [resolvable:$true] %s296_s19 }
  0x3f   : > { %v234_v7 = vmax.f32 %v233_v6, %v227_v5  ;;  %v254_v27 = vmax.f32 %v253_v22, %v230_v24  ;;  %s284_s15 = scalar_lea.sflag [#allocation5], %s774_s25  ;;  %s553_s16 = scalar_lea.vmem %s795_s19, 16 }
  0x40   : > { %p554_p8 = scmp.ne.s32.totalorder %s795_s19, %s553_s16  ;;  %s644_s30 = smov [#allocation8]  }
  0x41   : > { %v235_v8 = vsub.f32 %v224_v1, %v234_v7  ;;  %v238_v9 = vsub.f32 %v225_v2, %v234_v7  ;;  %v242_v10 = vsub.f32 %v226_v3, %v234_v7  ;;  %v246_v11 = vsub.f32 %v227_v5, %v234_v7  ;;  %s557_s12 = sshll.u32 %s644_s30, 4  ;;  %s558_s12 = int_to_ptr.vmem [resolvable:$false] %s557_s12 }
  0x42   : > { %v255_v29 = vmax.f32 %v254_v27, %v231_v28  ;;  %v263_v36 = vld [vmem:[#allocation2] sm:$0x3]  ;;  %p555_p0 = pnand %p554_p8, %p711_p9  ;;  %s559_s4 = scalar_lea.vmem %s558_s12, 32 }
  0x43   : > { %v236_v12 = vmul.f32 1.442695, %v235_v8  ;;  %v239_v13 = vmul.f32 1.442695, %v238_v9  ;;  %v243_v14 = vmul.f32 1.442695, %v242_v10  ;;  %p560_p5 = scmp.lt.s32.totalorder %s795_s19, %s558_s12  ;;  %p561_p6 = scmp.lt.s32.totalorder %s559_s4, %s553_s16 }
  0x44   : > { %v247_v15 = vmul.f32 1.442695, %v246_v11  ;;  %vm256_vm0 = vcmp.eq.f32.partialorder %v230_v24, %v255_v29  ;;  %vm258_vm1 = vcmp.eq.f32.partialorder %v229_v17, %v255_v29  ;;  %vm260_vm2 = vcmp.eq.f32.partialorder %v228_v16, %v255_v29  ;;  %p556_p2 = pneg %p555_p0 }
  0x45   : > { %487 = vpow2.f32 %v236_v12  ;;  %v257_v30 = vsel %vm256_vm0, %v226_v3, %v227_v5  ;;  %p562_p4 = por %p561_p6, %p560_p5 }
  0x46   : > { %489 = vpow2.f32 %v239_v13  ;;  %v259_v31 = vsel %vm258_vm1, %v225_v2, %v257_v30 }
  0x47   : > { %491 = vpow2.f32 %v243_v14  ;;  %v261_v34 = vsel %vm260_vm2, %v224_v1, %v259_v31  ;;  %p563_p7 = pnand %p562_p4, %p556_p2 }
  0x48   : > { %493 = vpow2.f32 %v247_v15 }
  0x52   : > { %v488_v18 = vpop.eup %487 }
  0x53   : > { %v490_v19 = vpop.eup %489 }
  0x54   : > { %v492_v20 = vpop.eup %491  ;;  %v241_v21 = vadd.f32 %v490_v19, %v488_v18 }
  0x55   : > { %v494_v23 = vpop.eup %493 }
  0x56   : > { %v245_v25 = vadd.f32 %v492_v20, %v241_v21 }
  0x58   : > { %v249_v26 = vadd.f32 %v494_v23, %v245_v25 }
  0x5a   : > { %495 = vlog2.f32 %v249_v26 }
  0x67   : > { %v496_v32 = vpop.eup %495 }
  0x68   : > { %v251_v33 = vmul.f32 0.6931472, %v496_v32 }
  0x6a   : > { %v252_v35 = vadd.f32 %v251_v33, %v234_v7 }
  0x6c   : > { %v262_v37 = vsub.f32 %v252_v35, %v261_v34 }
  0x6e   : > { %v264_v38 = vadd.f32 %v263_v36, %v262_v37 }
  0x70   : > { %265 = vst [vmem:[#allocation2] sm:$0x3] %v264_v38 }
  0x77   : > { %v269_v39 = vld [vmem:[#allocation2] sm:$0x3] }
  0x78   : > { %v271_v40 = vsel %vm270_vm3, %v269_v39, 0.0 }
  0x79   : > { %272 = vadd.xlane.f32.xlu0 %v271_v40 }
 0x102   : > { %v273_v41 = vpop.xlane.xlu0 %272 }
 0x103   : > { %v274_v42 = vrot.slane %v273_v41, 4 }
 0x105   : > { %v275_v43 = vadd.f32 %v274_v42, %v273_v41 }
 0x107   : > { %v276_v44 = vrot.slane %v275_v43, 2 }
 0x109   : > { %v277_v45 = vadd.f32 %v276_v44, %v275_v43 }
 0x10b   : > { %v278_v46 = vrot.slane %v277_v45, 1 }
 0x10d   : > { %v279_v47 = vadd.f32 %v278_v46, %v277_v45 }
 0x10f   : > { %415 = vpush %v279_v47 }
 0x140   : > { %s416_s29 = spop %415 }
 0x141   : > { %v281_v48 = vstv %s416_s29 }
 0x142   : > { %282 = vst [vmem:[%s218_s21] sm:$0x1] %v281_v48 }
 0x143   : > { %566 = shalt.err (!%p563_p7)
}
 0x144   : > { %s567_s27 = scalar_lea.hbm %s294_s8, 16  ;;  %s571_s6 = scalar_lea.hbm %s842_s2, 32 }
 0x145   : > { %p568_p10 = scmp.ne.s32.totalorder %s294_s8, %s567_s27  ;;  %p572_p3 = scmp.lt.s32.totalorder %s294_s8, %s842_s2 }
 0x146   : > { %p573_p8 = scmp.lt.s32.totalorder %s571_s6, %s567_s27 }
 0x147   : > { %p569_p1 = pnand %p568_p10, %p711_p9 }
 0x148   : > { %p574_p0 = por %p573_p8, %p572_p3 }
 0x149   : > { %p570_p13 = pneg %p569_p1 }
 0x14b   : > { %p575_p12 = pnand %p574_p0, %p570_p13 }
 0x14d   : > { %578 = shalt.err (!%p575_p12)
}
 0x14e   : > { %421 = dma.vmem_to_hbm [thread:$0]  (%p711_p9), %s795_s19, 16, %s294_s8, %s284_s15  }
 0x14f PF: > { %s308_s18 = sand.u32 1, %s617_s9   ;;  %p849_p2 = scmp.ge.s32.totalorder %s637_s14, 2 }
 0x150   : > { %s309_s21 = scalar_lea.sflag [#allocation5], %s308_s18 }
 0x151   : > { %p431_p5 = pnand %p849_p2, %p718_p11 }
 0x153   : > { %p432_p6 = pneg %p431_p5 }
 0x155   : > { %612 = dma.done.wait (%p432_p6), %s309_s21, 16  }
 0x156   : > { %614 = vsyncadd (%p432_p6), %s309_s21, 4294967280  ;;  %s21_s14 = sadd.s32 1, %s637_s14   ;;  %s850_s9 = smov %s621_s10 }
 0x157   : > { %p18_p4 = scmp.ge.s32.totalorder %s21_s14, 4   ;;  %s851_s10 = smov %s625_s11 }
 0x158   : > { %s852_s11 = smov %s716_s23  ;;  %s853_s12 = smov %s633_s13 }
 0x159   : > { %s854_s13 = smov %s856_s17  ;;  %20 = sbr.rel (!%p18_p4) target bundleno = 8 (0x8), region = 94 }
 0x15e   :  { %313 = vsyncpa [#allocation4], 1 }
 0x15f   :  { %315 = vsyncpa [#allocation4 + $0x1], 1 }
 0x160   :  { %316 = vsyncpa [#allocation7], 1 }
 0x161   :  { %318 = vsyncpa [#allocation7 + $0x1], 1 }
 0x162   :  { %319 = vsyncpa [#allocation5], 1 }
 0x163   :  { %321 = vsyncpa [#allocation5 + $0x1], 1 }

</bundles_post_ra>
